<compile_context>
chip_gen: v5e
topology: v5e:2x2
jax: 0.10.0
libtpu: 0.0.40
codegen_flags: <defaults>
</compile_context>

<pallas_src>
import jax
import jax.numpy as jnp
from jax.experimental import pallas as pl
from jax.experimental.pallas import tpu as pltpu


# ---------------- Pallas kernel ----------------

def _fused_gan_kernel(gt_ref, pred_ref, w1_ref, acc_g_ref, acc_p_ref, l1_ref):
    """Per (split, tile) step: accumulate first-layer partials for gt & pred + L1 partial.

    Outputs (acc_g, acc_p, l1) are per-split partial accumulators, resident in VMEM
    across the inner ("arbitrary") reduction axis.
    """
    k = pl.program_id(1)

    @pl.when(k == 0)
    def _init():
        acc_g_ref[...] = jnp.zeros_like(acc_g_ref)
        acc_p_ref[...] = jnp.zeros_like(acc_p_ref)
        l1_ref[...] = jnp.zeros_like(l1_ref)

    gt = gt_ref[...]                      # (N, TD) f32
    pred = pred_ref[...]                  # (N, TD) f32
    w1 = w1_ref[...]                      # (TD, HID) bf16 (streamed from HBM once, shared)

    # First-layer partial sums: bf16 MXU inputs, f32 accumulation in the output blocks.
    acc_g_ref[...] += jnp.dot(gt.astype(jnp.bfloat16), w1,
                              preferred_element_type=jnp.float32)
    acc_p_ref[...] += jnp.dot(pred.astype(jnp.bfloat16), w1,
                              preferred_element_type=jnp.float32)

    # L1 partial sum (f32). XLU cross-lane reduce — a free slot in this mem-bound kernel.
    l1_ref[...] += jnp.sum(jnp.abs(pred - gt))


# ---------------- wrappers ----------------

def _plan_tiles(D, num_splits, target_td):
    """Pick (num_splits, tile_d, tiles_per_split) with D = num_splits * tiles_per_split * tile_d.

    tile_d is a multiple of 128 (or the full extent when no 128-aligned tiling exists).
    """
    if num_splits > 1 and D % (num_splits * 128) == 0:
        d_split = D // num_splits
    else:
        num_splits = 1
        d_split = D
    if d_split % 128 != 0 or d_split <= target_td:
        return num_splits, d_split, 1
    td = (max(target_td, 128) // 128) * 128
    while d_split % td != 0:
        td -= 128
    return num_splits, td, d_split // td


def fused_gan_reductions(gt_f, pred_f, w1, *, tile_d=4096, num_splits=2):
    """One pallas_call. Returns per-split partials:
       acc_g, acc_p : (S, N, HID) f32  (first-layer pre-activations, summed over D tiles)
       l1_parts     : (S, 1, 1)   f32  (partial sums of |pred - gt|)
    """
    N, D = gt_f.shape
    HID = w1.shape[1]
    S, td, kt = _plan_tiles(D, num_splits, tile_d)

    # Advisory cost: bandwidth-heavy custom call (pred+gt f32 once, w1 bf16 once).
    cost = pl.CostEstimate(
        flops=2 * (2 * N) * D * HID + 4 * N * D,
        transcendentals=0,
        bytes_accessed=2 * N * D * 4 + D * HID * 2 + (2 * S * N * HID + S) * 4,
    )

    acc_shape = jax.ShapeDtypeStruct((S, N, HID), jnp.float32)
    acc_spec = pl.BlockSpec((None, N, HID), lambda c, k: (c, 0, 0))
    l1_shape = jax.ShapeDtypeStruct((S, 1, 1), jnp.float32)
    l1_spec = pl.BlockSpec((None, 1, 1), lambda c, k: (c, 0, 0))

    acc_g, acc_p, l1_parts = pl.pallas_call(
        _fused_gan_kernel,
        out_shape=(acc_shape, acc_shape, l1_shape),
        grid_spec=pltpu.PrefetchScalarGridSpec(
            num_scalar_prefetch=0,
            grid=(S, kt),
            in_specs=[
                pl.BlockSpec((N, td), lambda c, k: (0, c * kt + k)),     # gt tile   (f32)
                pl.BlockSpec((N, td), lambda c, k: (0, c * kt + k)),     # pred tile (f32)
                pl.BlockSpec((td, HID), lambda c, k: (c * kt + k, 0)),   # w1 tile   (bf16)
            ],
            out_specs=(acc_spec, acc_spec, l1_spec),
        ),
        compiler_params=pltpu.CompilerParams(
            # split axis shards across TensorCores on v7x; D-tile axis is the reduction
            dimension_semantics=("parallel", "arbitrary"),
        ),
        cost_estimate=cost,
    )(gt_f, pred_f, w1)
    return acc_g, acc_p, l1_parts


def gan_loss_forward(pred, gt, params, gen_w=0.1, tile_d=4096, num_splits=2):
    """GANLoss.forward with LSGAN criterion, arch_type='plain'. pred/gt: NCHW float32."""
    N = pred.shape[0]
    pred_f = pred.reshape(N, -1).astype(jnp.float32)
    gt_f = gt.reshape(N, -1).astype(jnp.float32)
    D = pred_f.shape[1]
    w1, b1, w2_row, b2 = params

    acc_g, acc_p, l1_parts = fused_gan_reductions(
        gt_f, pred_f, w1, tile_d=tile_d, num_splits=num_splits)

    # Tiny head on (N, HID) partials — plain-JAX glue, fuses with the loss scalars.
    def head_mean(acc_parts):
        acc = jnp.sum(acc_parts, axis=0)                    # combine per-split partials
        h = acc + b1                                        # (N, HID)
        h = jnp.where(h > 0, h, 0.2 * h)                    # LeakyReLU(0.2)
        scores = jnp.sum(h * w2_row, axis=-1) + b2[0, 0]    # (N,) disc outputs
        return jnp.mean(scores)

    mean_real = head_mean(acc_g)                            # mean(disc(gt))
    mean_fake = head_mean(acc_p)                            # mean(disc(pred))
    l1_error = jnp.sum(l1_parts) / (N * D)                  # mean(|pred - gt|)

    # LSGAN.disc_loss(real=gt, fake=pred)
    disc_loss = 0.5 * ((mean_real - 1.0) ** 2 + mean_fake ** 2)
    # LSGAN.gen_loss(fake=pred)
    gen_loss_ = 0.5 * (mean_fake - 1.0) ** 2
    # arch_type != 'msg' -> full-tensor L1
    gen_loss = l1_error + gen_w * gen_loss_
    return [disc_loss, gen_loss]


def make_disc_params(in_dim, hidden, key):
    k1, k2, k3, k4 = jax.random.split(key, 4)
    # w1 stored in bf16: it dominates HBM traffic of this memory-bound kernel.
    w1 = (jax.random.normal(k1, (in_dim, hidden), jnp.float32)
          * (1.0 / jnp.sqrt(in_dim))).astype(jnp.bfloat16)
    b1 = jax.random.normal(k2, (1, hidden), jnp.float32) * 0.01
    w2 = (jax.random.normal(k3, (1, hidden), jnp.float32)
          * (1.0 / jnp.sqrt(hidden)))                       # second layer kept as a row
    b2 = jax.random.normal(k4, (1, 1), jnp.float32) * 0.01
    return w1, b1, w2, b2


if __name__ == "__main__":
    key = jax.random.PRNGKey(0)
    kp, kg, kw = jax.random.split(key, 3)

    N, C, H, W = 2, 4, 16, 16          # small NCHW shapes
    HID = 128                          # discriminator hidden width (lane-aligned)
    D = C * H * W                      # 1024

    pred = jax.random.normal(kp, (N, C, H, W), jnp.float32)
    gt = jax.random.normal(kg, (N, C, H, W), jnp.float32)
    params = make_disc_params(D, HID, kw)

    # tile_d=256 / num_splits=2 exercises the (split, tile) reduction grid even at this
    # toy size; at real image sizes use the default tile_d (2048-4096, v7x-safe).
    fwd = jax.jit(lambda p, g: gan_loss_forward(p, g, params, gen_w=0.1,
                                                tile_d=256, num_splits=2))
    disc_loss, gen_loss = fwd(pred, gt)
    jax.block_until_ready((disc_loss, gen_loss))

    # reference check in plain JAX (identical bf16 first-layer math, f32 elsewhere)
    w1, b1, w2_row, b2 = params

    def ref_disc(x):
        xb = x.reshape(N, -1).astype(jnp.bfloat16)
        h = jnp.dot(xb, w1, preferred_element_type=jnp.float32) + b1
        h = jnp.where(h > 0, h, 0.2 * h)
        return jnp.sum(h * w2_row, axis=-1, keepdims=True) + b2[0, 0]

    mr = jnp.mean(ref_disc(gt))
    mf = jnp.mean(ref_disc(pred))
    ref_disc_loss = 0.5 * ((mr - 1.0) ** 2 + mf ** 2)
    ref_gen_loss = jnp.mean(jnp.abs(pred - gt)) + 0.1 * 0.5 * (mf - 1.0) ** 2

    assert jnp.allclose(disc_loss, ref_disc_loss, atol=1e-4, rtol=1e-4), (disc_loss, ref_disc_loss)
    assert jnp.allclose(gen_loss, ref_gen_loss, atol=1e-4, rtol=1e-4), (gen_loss, ref_gen_loss)

    print("KERNEL_OK")
</pallas_src>

<mosaic_0001>
module attributes {stable_mosaic.version = 11 : i64} {
  func.func @_fused_gan_kernel(%arg0: i32, %arg1: i32, %arg2: memref<2x256xf32, #tpu.memory_space<vmem>>, %arg3: memref<2x256xf32, #tpu.memory_space<vmem>>, %arg4: memref<256x128xbf16, #tpu.memory_space<vmem>>, %arg5: memref<1x2x128xf32, #tpu.memory_space<vmem>>, %arg6: memref<1x2x128xf32, #tpu.memory_space<vmem>>, %arg7: memref<1x1x1xf32, #tpu.memory_space<vmem>>) attributes {dimension_semantics = [#tpu.dimension_semantics<parallel>, #tpu.dimension_semantics<arbitrary>], iteration_bounds = array<i64: 2, 2>, scalar_prefetch = 0 : i64, scratch_operands = 0 : i64, tpu.core_type = #tpu.core_type<tc>, window_params = [{transform_indices = @transform_0, window_bounds = array<i64: 2, 256>}, {transform_indices = @transform_1, window_bounds = array<i64: 2, 256>}, {transform_indices = @transform_2, window_bounds = array<i64: 256, 128>}, {transform_indices = @transform_3, window_bounds = array<i64: 1, 2, 128>}, {transform_indices = @transform_4, window_bounds = array<i64: 1, 2, 128>}, {transform_indices = @transform_5, window_bounds = array<i64: 1, 1, 1>}]} {
    %c0_i32 = arith.constant 0 : i32
    %0 = arith.cmpi eq, %arg1, %c0_i32 : i32
    %1 = arith.extui %0 : i1 to i32
    %c0_i32_0 = arith.constant 0 : i32
    %2 = arith.cmpi ne, %1, %c0_i32_0 : i32
    scf.if %2 {
      %cst_26 = arith.constant 0.000000e+00 : f32
      %35 = vector.broadcast %cst_26 : f32 to vector<2x128xf32>
      %c0_27 = arith.constant 0 : index
      %c0_28 = arith.constant 0 : index
      %c0_29 = arith.constant 0 : index
      %36 = vector.load %arg5[%c0_27, %c0_28, %c0_29] : memref<1x2x128xf32, #tpu.memory_space<vmem>>, vector<1x2x128xf32>
      %37 = vector.shape_cast %36 : vector<1x2x128xf32> to vector<2x128xf32>
      %38 = vector.shape_cast %35 : vector<2x128xf32> to vector<1x2x128xf32>
      tpu.vector_store %arg5[%c0_27, %c0_28, %c0_29], %38 {strides = array<i32>} : memref<1x2x128xf32, #tpu.memory_space<vmem>>, vector<1x2x128xf32>,
      %cst_30 = arith.constant 0.000000e+00 : f32
      %39 = vector.broadcast %cst_30 : f32 to vector<2x128xf32>
      %c0_31 = arith.constant 0 : index
      %c0_32 = arith.constant 0 : index
      %c0_33 = arith.constant 0 : index
      %40 = vector.load %arg6[%c0_31, %c0_32, %c0_33] : memref<1x2x128xf32, #tpu.memory_space<vmem>>, vector<1x2x128xf32>
      %41 = vector.shape_cast %40 : vector<1x2x128xf32> to vector<2x128xf32>
      %42 = vector.shape_cast %39 : vector<2x128xf32> to vector<1x2x128xf32>
      tpu.vector_store %arg6[%c0_31, %c0_32, %c0_33], %42 {strides = array<i32>} : memref<1x2x128xf32, #tpu.memory_space<vmem>>, vector<1x2x128xf32>,
      %cst_34 = arith.constant 0.000000e+00 : f32
      %43 = vector.broadcast %cst_34 : f32 to vector<1x1xf32>
      %c0_35 = arith.constant 0 : index
      %c0_36 = arith.constant 0 : index
      %c0_37 = arith.constant 0 : index
      %44 = vector.load %arg7[%c0_35, %c0_36, %c0_37] : memref<1x1x1xf32, #tpu.memory_space<vmem>>, vector<1x1x1xf32>
      %45 = vector.shape_cast %44 : vector<1x1x1xf32> to vector<1x1xf32>
      %46 = vector.shape_cast %43 : vector<1x1xf32> to vector<1x1x1xf32>
      tpu.vector_store %arg7[%c0_35, %c0_36, %c0_37], %46 {strides = array<i32>} : memref<1x1x1xf32, #tpu.memory_space<vmem>>, vector<1x1x1xf32>,
    } else {
    }
    %c0 = arith.constant 0 : index
    %c0_1 = arith.constant 0 : index
    %3 = vector.load %arg2[%c0, %c0_1] : memref<2x256xf32, #tpu.memory_space<vmem>>, vector<2x256xf32>
    %c0_2 = arith.constant 0 : index
    %c0_3 = arith.constant 0 : index
    %4 = vector.load %arg3[%c0_2, %c0_3] : memref<2x256xf32, #tpu.memory_space<vmem>>, vector<2x256xf32>
    %c0_4 = arith.constant 0 : index
    %c0_5 = arith.constant 0 : index
    %5 = vector.load %arg4[%c0_4, %c0_5] : memref<256x128xbf16, #tpu.memory_space<vmem>>, vector<256x128xbf16>
    %c0_6 = arith.constant 0 : index
    %c0_7 = arith.constant 0 : index
    %c0_8 = arith.constant 0 : index
    %6 = vector.load %arg5[%c0_6, %c0_7, %c0_8] : memref<1x2x128xf32, #tpu.memory_space<vmem>>, vector<1x2x128xf32>
    %7 = vector.shape_cast %6 : vector<1x2x128xf32> to vector<2x128xf32>
    %8 = arith.truncf %3 : vector<2x256xf32> to vector<2x256xbf16>
    %cst = arith.constant dense<0.000000e+00> : vector<2x128xf32>
    %9 = tpu.matmul %8, %5, %cst {dimension_numbers = #tpu.dot_dimension_numbers<[1], [0], [0], [1], [0, 0, 1, 1], [], []>} : vector<2x256xbf16>, vector<256x128xbf16>, vector<2x128xf32> -> vector<2x128xf32>
    %10 = arith.addf %7, %9 : vector<2x128xf32>
    %c0_9 = arith.constant 0 : index
    %c0_10 = arith.constant 0 : index
    %c0_11 = arith.constant 0 : index
    %11 = vector.load %arg5[%c0_9, %c0_10, %c0_11] : memref<1x2x128xf32, #tpu.memory_space<vmem>>, vector<1x2x128xf32>
    %12 = vector.shape_cast %11 : vector<1x2x128xf32> to vector<2x128xf32>
    %13 = vector.shape_cast %10 : vector<2x128xf32> to vector<1x2x128xf32>
    tpu.vector_store %arg5[%c0_9, %c0_10, %c0_11], %13 {strides = array<i32>} : memref<1x2x128xf32, #tpu.memory_space<vmem>>, vector<1x2x128xf32>,
    %c0_12 = arith.constant 0 : index
    %c0_13 = arith.constant 0 : index
    %c0_14 = arith.constant 0 : index
    %14 = vector.load %arg6[%c0_12, %c0_13, %c0_14] : memref<1x2x128xf32, #tpu.memory_space<vmem>>, vector<1x2x128xf32>
    %15 = vector.shape_cast %14 : vector<1x2x128xf32> to vector<2x128xf32>
    %16 = arith.truncf %4 : vector<2x256xf32> to vector<2x256xbf16>
    %cst_15 = arith.constant dense<0.000000e+00> : vector<2x128xf32>
    %17 = tpu.matmul %16, %5, %cst_15 {dimension_numbers = #tpu.dot_dimension_numbers<[1], [0], [0], [1], [0, 0, 1, 1], [], []>} : vector<2x256xbf16>, vector<256x128xbf16>, vector<2x128xf32> -> vector<2x128xf32>
    %18 = arith.addf %15, %17 : vector<2x128xf32>
    %c0_16 = arith.constant 0 : index
    %c0_17 = arith.constant 0 : index
    %c0_18 = arith.constant 0 : index
    %19 = vector.load %arg6[%c0_16, %c0_17, %c0_18] : memref<1x2x128xf32, #tpu.memory_space<vmem>>, vector<1x2x128xf32>
    %20 = vector.shape_cast %19 : vector<1x2x128xf32> to vector<2x128xf32>
    %21 = vector.shape_cast %18 : vector<2x128xf32> to vector<1x2x128xf32>
    tpu.vector_store %arg6[%c0_16, %c0_17, %c0_18], %21 {strides = array<i32>} : memref<1x2x128xf32, #tpu.memory_space<vmem>>, vector<1x2x128xf32>,
    %c0_19 = arith.constant 0 : index
    %c0_20 = arith.constant 0 : index
    %c0_21 = arith.constant 0 : index
    %22 = vector.load %arg7[%c0_19, %c0_20, %c0_21] : memref<1x1x1xf32, #tpu.memory_space<vmem>>, vector<1x1x1xf32>
    %23 = vector.shape_cast %22 : vector<1x1x1xf32> to vector<1x1xf32>
    %24 = arith.subf %4, %3 : vector<2x256xf32>
    %25 = math.absf %24 : vector<2x256xf32>
    %26 = vector.shape_cast %25 : vector<2x256xf32> to vector<1x2x256xf32>
    %cst_22 = arith.constant dense<0.000000e+00> : vector<1xf32>
    %27 = vector.multi_reduction <add>, %26, %cst_22 [1, 2] : vector<1x2x256xf32> to vector<1xf32>
    %28 = vector.shape_cast %27 : vector<1xf32> to vector<1x1x1xf32>
    %29 = vector.extract %28[0, 0, 0] : f32 from vector<1x1x1xf32>
    %30 = vector.broadcast %29 : f32 to vector<1x1xf32>
    %31 = arith.addf %23, %30 : vector<1x1xf32>
    %c0_23 = arith.constant 0 : index
    %c0_24 = arith.constant 0 : index
    %c0_25 = arith.constant 0 : index
    %32 = vector.load %arg7[%c0_23, %c0_24, %c0_25] : memref<1x1x1xf32, #tpu.memory_space<vmem>>, vector<1x1x1xf32>
    %33 = vector.shape_cast %32 : vector<1x1x1xf32> to vector<1x1xf32>
    %34 = vector.shape_cast %31 : vector<1x1xf32> to vector<1x1x1xf32>
    tpu.vector_store %arg7[%c0_23, %c0_24, %c0_25], %34 {strides = array<i32>} : memref<1x1x1xf32, #tpu.memory_space<vmem>>, vector<1x1x1xf32>,
    return
  }
  func.func @transform_0(%arg0: i32, %arg1: i32) -> (i32, i32) {
    %c2_i32 = arith.constant 2 : i32
    %0 = arith.muli %arg0, %c2_i32 : i32
    %1 = arith.addi %0, %arg1 : i32
    %c0_i32 = arith.constant 0 : i32
    %c0_i32_0 = arith.constant 0 : i32
    return %c0_i32, %1 : i32, i32
  }
  func.func @transform_1(%arg0: i32, %arg1: i32) -> (i32, i32) {
    %c2_i32 = arith.constant 2 : i32
    %0 = arith.muli %arg0, %c2_i32 : i32
    %1 = arith.addi %0, %arg1 : i32
    %c0_i32 = arith.constant 0 : i32
    %c0_i32_0 = arith.constant 0 : i32
    return %c0_i32, %1 : i32, i32
  }
  func.func @transform_2(%arg0: i32, %arg1: i32) -> (i32, i32) {
    %c2_i32 = arith.constant 2 : i32
    %0 = arith.muli %arg0, %c2_i32 : i32
    %1 = arith.addi %0, %arg1 : i32
    %c0_i32 = arith.constant 0 : i32
    %c0_i32_0 = arith.constant 0 : i32
    return %1, %c0_i32 : i32, i32
  }
  func.func @transform_3(%arg0: i32, %arg1: i32) -> (i32, i32, i32) {
    %c0_i32 = arith.constant 0 : i32
    %c0_i32_0 = arith.constant 0 : i32
    %c0_i32_1 = arith.constant 0 : i32
    return %arg0, %c0_i32, %c0_i32_0 : i32, i32, i32
  }
  func.func @transform_4(%arg0: i32, %arg1: i32) -> (i32, i32, i32) {
    %c0_i32 = arith.constant 0 : i32
    %c0_i32_0 = arith.constant 0 : i32
    %c0_i32_1 = arith.constant 0 : i32
    return %arg0, %c0_i32, %c0_i32_0 : i32, i32, i32
  }
  func.func @transform_5(%arg0: i32, %arg1: i32) -> (i32, i32, i32) {
    %c0_i32 = arith.constant 0 : i32
    %c0_i32_0 = arith.constant 0 : i32
    %c0_i32_1 = arith.constant 0 : i32
    return %arg0, %c0_i32, %c0_i32_0 : i32, i32, i32
  }
}

</mosaic_0001>

<bundles_post_ra>
// kernel: _lambda_.1
= control target key start
LH: loop header
LB: loop body
LE: loop exit
PB: predicated region body
PF: predicated region fallthrough
CT: control target
= control target key end

     0   :  { %s1227_s0 = inlined_call_operand.vmem [shape: f32[2,1024], index: 0, kind: input, shape index: {}]   ;;  %s1228_s1 = inlined_call_operand.vmem [shape: f32[2,1024], index: 1, kind: input, shape index: {}]   ;;  %s1229_s2 = inlined_call_operand.hbm [shape: bf16[1024,128], index: 2, kind: input, shape index: {}]   ;;  %s1230_s3 = inlined_call_operand.vmem [shape: f32[2,2,128], index: 3, kind: output, shape index: {0}]   ;;  %s1231_s4 = inlined_call_operand.vmem [shape: f32[2,2,128], index: 4, kind: output, shape index: {1}]   ;;  %s1232_s5 = inlined_call_operand.vmem [shape: f32[2,1,1], index: 5, kind: output, shape index: {2}]  }
   0x1   :  { %1235 = sst [smem:[#allocation7_spill]] %s1229_s2 }
   0x2   :  { %11 = vsyncpa [#allocation3], 0 }
   0x3   :  { %13 = vsyncpa [#allocation3 + $0x1], 0  ;;  %s1068_s18 = smov 0   ;;  %s1070_s19 = smov 0  }
   0x4   :  { %s1072_s20 = smov 0   ;;  %s1074_s21 = smov 0  }
   0x5   :  { %s1076_s22 = smov 0   ;;  %s1078_s23 = smov 0  }
   0x6   :  { %s1080_s24 = smov 0   ;;  %s1082_s25 = smov 0  }
   0x7 LB: > { %1236 = sst [smem:[#allocation5_spill]] %s1029_s24  ;;  %s753_s26 = sadd.s32 4294967295, %s1033_s25   ;;  %s1033_s25 = sphi %s1082_s25, %s19_s25   ;;  %s1029_s24 = sphi %s1080_s24, %s1242_s24   ;;  %s1025_s23 = sphi %s1078_s23, %s1247_s23   ;;  %s1021_s22 = sphi %s1076_s22, %s1241_s22   ;;  %s1017_s21 = sphi %s1074_s21, %s1246_s21   ;;  %s1013_s20 = sphi %s1072_s20, %s1245_s20   ;;  %s1009_s19 = sphi %s1070_s19, %s1244_s19   ;;  %s1005_s18 = sphi %s1068_s18, %s1243_s18  }
   0x8   : > { %s28_s27 = sadd.s32 1, %s1025_s23  ;;  %s31_s28 = sadd.s32 1, %s1029_s24 }
   0x9   : > { %p29_p0 = scmp.ge.s32.totalorder %s28_s27, 2  ;;  %s759_s29 = sshll.u32 %s1029_s24, 1 }
   0xa   : > { %s102_s30 = sadd.s32 1, %s1013_s20  ;;  %s96_s6 = sadd.s32 %s1025_s23, %s759_s29 }
   0xb   : > { %s1249_s27 = smov (%p29_p0, %s28_s27), 0  ;;  %s1251_s28 = smov (!%p29_p0, %s31_s28), %s1029_s24 }
   0xc   : > { %p109_p1 = scmp.ne.s32.totalorder %s1013_s20, %s1009_s19  ;;  %p33_p2 = scmp.ge.s32.totalorder %s1251_s28, 2 }
   0xd   : > { %p110_p3 = scmp.eq.s32.totalorder %s1033_s25, 0  ;;  %p115_p4 = scmp.ne.s32.totalorder %s1009_s19, %s1005_s18 }
   0xe   : > { %p116_p5 = scmp.eq.s32.totalorder %s753_s26, 0  ;;  %s1253_s28 = smov (%p33_p2, %s1251_s28), 0 }
   0xf   : > { %1237 = sst [smem:[#allocation6_spill]] %s1253_s28  ;;  %p1121_p6 = por %p110_p3, %p109_p1 }
  0x10   : > { %p1125_p7 = por %p116_p5, %p115_p4  ;;  %s760_s9 = sshll.u32 %s1253_s28, 1 }
  0x11   : > { %s98_s10 = sadd.s32 %s760_s9, %s1249_s27  ;;  %p869_p8 = scmp.lt.s32.totalorder %s1033_s25, 4 }
  0x12   : > { %s99_s11 = ssub.s32 %s96_s6, %s98_s10  ;;  %s243_s12 = sand.u32 1, %s1013_s20  }
  0x13   : > { %p100_p9 = scmp.eq.s32.totalorder %s99_s11, 0  ;;  %s763_s13 = sshll.u32 %s243_s12, 7 }
  0x14   : > { %s844_s14 = sshll.u32 %s96_s6, 7  ;;  %s1240_s2 = sld [smem:[#allocation7_spill]] }
  0x15   : > { %s1134_s15 = scalar_select %p100_p9, %s1013_s20, %s102_s30  }
  0x16   : > { %s247_s29 = scalar_lea.vmem [#allocation2], %s763_s13  ;;  %p866_p10 = pnand %p869_p8, %p1121_p6 }
  0x17   : > { %s257_s24 = sshll.u32 %s247_s29, 4  ;;  %p767_p11 = scmp.ge.s32.totalorder %s1033_s25, 1  ;;  %s258_s24 = int_to_ptr.vmem [resolvable:$true] %s257_s24 }
  0x18   : > { %p265_p12 = scmp.lt.s32.totalorder %s1033_s25, 5  ;;  %s244_s9 = scalar_lea.sflag [#allocation3], %s243_s12 }
  0x19   : > { %s1035_s10 = smov 64   ;;  %s1036_s11 = smov 4  }
  0x1a   : > { %s254_s18 = scalar_lea.hbm %s1240_s2, %s844_s14  ;;  %p266_p13 = pnand %p767_p11, %p265_p12 }
  0x1b   : > { %s255_s26 = sshll.u32 %s254_s18, 4  ;;  %s271_s30 = sand.u32 (!%p266_p13), 1, %s1009_s19   ;;  %s256_s26 = int_to_ptr.hbm [resolvable:$true] %s255_s26 }
  0x1c   : > { %868 = dma.hbm_to_vmem [thread:$0]  (!%p866_p10), %s256_s26, 2048, %s258_s24, %s244_s9, %s1035_s10, %s1035_s10, %s1036_s11  }
  0x1d   : > { %269 = sbr.rel (%p266_p13) target bundleno = 260 (0x104), region = 32  ;;  %s768_s6 = sshll.u32 (!%p266_p13), %s271_s30, 7 }
  0x1e   : > { %s272_s14 = scalar_lea.sflag (!%p266_p13), [#allocation3], %s271_s30  ;;  %s1146_s13 = scalar_lea.vmem (!%p266_p13), [#allocation2], %s768_s6 }
  0x22   : > { %1000 = dma.done.wait (%p1125_p7), %s272_s14, 2048  }
  0x23   : > { %1002 = vsyncadd (%p1125_p7), %s272_s14, 4294965248  ;;  %s769_s7 = sshll.u32 %s1021_s22, 1  ;;  %p346_p0 = scmp.lt.s32.totalorder %s1021_s22, 1 }
  0x24   : > { %s324_s24 = sadd.s32 %s1017_s21, %s769_s7  ;;  %p777_p2 = scmp.ne.s32.totalorder %s1017_s21, 0 }
  0x25   : > { %s770_s12 = sshll.u32 %s324_s24, 1  ;;  %s1255_s22 = smov (!%p346_p0, %s1021_s22), 1 }
  0x26   : > { %p326_p1 = scmp.lt.s32.totalorder %s770_s12, 7  ;;  %s775_s16 = sshll.u32 %s1255_s22, 1 }
  0x27   : > { %s1159_s26 = scalar_lea.vmem %s1232_s5, %s1255_s22  ;;  %s1164_s10 = scalar_lea.vmem %s1230_s3, %s775_s16 }
  0x28   : > { %s1257_s12 = smov (!%p326_p1, %s770_s12), 7  ;;  %s1175_s17 = scalar_lea.vmem %s1231_s4, %s775_s16 }
  0x29   : > { %s771_s29 = sshll.u32 %s1257_s12, 1  ;;  %360 = sbr.rel (%p777_p2) target bundleno = 50 (0x32), region = 40 }
  0x2a   : > { %s329_s6 = scalar_lea.vmem %s1227_s0, %s771_s29  ;;  %s339_s24 = scalar_lea.vmem %s1228_s1, %s771_s29 }
  0x2e   : > { %vm363_vm0 = vcmask 0   ;;  %v1037_v0 = vmov 0.0  }
  0x2f   : > { %361 = vst [vmem:[%s1164_s10] sm:$0x3] %v1037_v0 }
  0x30   : > { %362 = vst [vmem:[%s1175_s17] sm:$0x3] %v1037_v0 }
  0x31   : > { %364 = vst.msk [vmem:[%s1159_s26] sm:$0x1] %vm363_vm0, %v1037_v0 }
  0x32 PF: > { %v365_v1 = vld [vmem:[%s329_s6] sm:$0xf]  ;;  %v851_v4 = vld [vmem:[%s1146_s13 + $0x30] sm:$0xff]  ;;  %v850_v7 = vld [vmem:[%s1146_s13 + $0x28] sm:$0xff]  ;;  %vm578_vm1 = vcmask 1041408   ;;  %vm593_vm2 = vcmask 0  }
  0x33   : > { %v852_v2 = vld [vmem:[%s1146_s13 + $0x38] sm:$0xff]  ;;  %401 = vst [vmem:[#allocation1] ss:$4 sm:$0xff] %v365_v1  ;;  %v859_v5 = vld [vmem:[%s1146_s13 + $0x70] sm:$0xff]  ;;  %v858_v8 = vld [vmem:[%s1146_s13 + $0x68] sm:$0xff] }
  0x34   : > { %v860_v3 = vld [vmem:[%s1146_s13 + $0x78] sm:$0xff]  ;;  %541 = vmatpush.bf16.msra.mxu2 %v852_v2  ;;  %504 = vmatpush.bf16.msra.mxu0 %v852_v2  ;;  %v849_v12 = vld [vmem:[%s1146_s13 + $0x20] sm:$0xff]  ;;  %v847_v19 = vld [vmem:[%s1146_s13 + $0x10] sm:$0xff] }
  0x35   : > { %554 = vmatpush.bf16.msra.mxu3 %v860_v3  ;;  %517 = vmatpush.bf16.msra.mxu1 %v860_v3  ;;  %v366_v6 = vld [vmem:[%s339_s24] sm:$0xf]  ;;  %v857_v13 = vld [vmem:[%s1146_s13 + $0x60] sm:$0xff]  ;;  %v855_v20 = vld [vmem:[%s1146_s13 + $0x50] sm:$0xff] }
  0x36   : > { %v570_v11 = vsub.f32 %v366_v6, %v365_v1  ;;  %v848_v15 = vld [vmem:[%s1146_s13 + $0x18] sm:$0xff]  ;;  %v846_v21 = vld [vmem:[%s1146_s13 + $0x8] sm:$0xff]  ;;  %v845_v28 = vld [vmem:[%s1146_s13] sm:$0xff] }
  0x37   : > { %v856_v16 = vld [vmem:[%s1146_s13 + $0x58] sm:$0xff]  ;;  %v854_v22 = vld [vmem:[%s1146_s13 + $0x48] sm:$0xff]  ;;  %v853_v29 = vld [vmem:[%s1146_s13 + $0x40] sm:$0xff] }
  0x38   : > { %542 = vmatpush.bf16.msra.mxu2 %v851_v4  ;;  %505 = vmatpush.bf16.msra.mxu0 %v851_v4  ;;  %v571_v14 = vand.u32 2147483647, %v570_v11  ;;  %v399_v42 = vld [vmem:[%s1164_s10] sm:$0x3] }
  0x39   : > { %555 = vmatpush.bf16.msra.mxu3 %v859_v5  ;;  %518 = vmatpush.bf16.msra.mxu1 %v859_v5  ;;  %v532_v47 = vld [vmem:[%s1175_s17] sm:$0x3] }
  0x3a   : > { %v402_v9 = vld.sshfl [vmem:[#allocation1] sm:$0xff pattern:$0x73625140]  ;;  %v403_v10 = vld.sshfl [vmem:[#allocation1 + $0x8] sm:$0xff pattern:$0x73625140] }
  0x3b   : > { %534 = vst [vmem:[#allocation1] ss:$4 sm:$0xff] %v366_v6  ;;  %v406_v31 = vpack.c.bf16 %v402_v9, %v402_v9  ;;  %v407_v33 = vpack.c.bf16 %v403_v10, %v403_v10  ;;  %v569_v55 = vld [vmem:[%s1159_s26] sm:$0x1] }
  0x3c   : > { %543 = vmatpush.bf16.msra.mxu2 %v850_v7  ;;  %506 = vmatpush.bf16.msra.mxu0 %v850_v7 }
  0x3d   : > { %556 = vmatpush.bf16.msra.mxu3 %v858_v8  ;;  %519 = vmatpush.bf16.msra.mxu1 %v858_v8 }
  0x40   : > { %544 = vmatpush.bf16.msra.mxu2 %v849_v12  ;;  %507 = vmatpush.bf16.msra.mxu0 %v849_v12 }
  0x41   : > { %557 = vmatpush.bf16.msra.mxu3 %v857_v13  ;;  %520 = vmatpush.bf16.msra.mxu1 %v857_v13 }
  0x42   : > { %v535_v17 = vld.sshfl [vmem:[#allocation1] sm:$0xff pattern:$0x73625140]  ;;  %v536_v18 = vld.sshfl [vmem:[#allocation1 + $0x8] sm:$0xff pattern:$0x73625140] }
  0x43   : > { %573 = vst [vmem:[#allocation1] ss:$4 sm:$0xff] %v571_v14  ;;  %v539_v30 = vpack.c.bf16 %v535_v17, %v535_v17  ;;  %v540_v32 = vpack.c.bf16 %v536_v18, %v536_v18 }
  0x44   : > { %545 = vmatpush.bf16.msra.mxu2 %v848_v15  ;;  %508 = vmatpush.bf16.msra.mxu0 %v848_v15 }
  0x45   : > { %558 = vmatpush.bf16.msra.mxu3 %v856_v16  ;;  %521 = vmatpush.bf16.msra.mxu1 %v856_v16 }
  0x48   : > { %546 = vmatpush.bf16.msra.mxu2 %v847_v19  ;;  %509 = vmatpush.bf16.msra.mxu0 %v847_v19 }
  0x49   : > { %559 = vmatpush.bf16.msra.mxu3 %v855_v20  ;;  %522 = vmatpush.bf16.msra.mxu1 %v855_v20 }
  0x4a   : > { %v574_v23 = vld.sshfl [vmem:[#allocation1] sm:$0xff pattern:$0x73625140]  ;;  %v575_v24 = vld.sshfl [vmem:[#allocation1 + $0x8] sm:$0xff pattern:$0x73625140] }
  0x4b   : > { %v579_v25 = vsel %vm578_vm1, %v574_v23, 0.0  ;;  %v580_v26 = vsel %vm578_vm1, %v575_v24, 0.0 }
  0x4c   : > { %v581_v27 = vadd.f32 %v580_v26, %v579_v25  ;;  %547 = vmatpush.bf16.msra.mxu2 %v846_v21  ;;  %510 = vmatpush.bf16.msra.mxu0 %v846_v21 }
  0x4d   : > { %560 = vmatpush.bf16.msra.mxu3 %v854_v22  ;;  %523 = vmatpush.bf16.msra.mxu1 %v854_v22 }
  0x4e   : > { %582 = vadd.xlane.f32.xlu0 %v581_v27 }
  0x50   : > { %548 = vmatpush.bf16.msra.mxu2 %v845_v28  ;;  %511 = vmatpush.bf16.msra.mxu0 %v845_v28 }
  0x51   : > { %561 = vmatpush.bf16.msra.mxu3 %v853_v29  ;;  %524 = vmatpush.bf16.msra.mxu1 %v853_v29 }
  0x53   : > { %549 = vmatmul.bf16.vlgmr.msra.gmra.mxu2 %v539_v30  ;;  %512 = vmatmul.bf16.vlgmr.msra.gmra.mxu0 %v406_v31 }
  0x54   : > { %562 = vmatmul.bf16.vlgmr.msra.gmra.mxu3 %v540_v32  ;;  %525 = vmatmul.bf16.vlgmr.msra.gmra.mxu1 %v407_v33 }
  0xc1   : > { %v583_v34 = vpop.xlane.xlu0 %582 }
  0xc2   : > { %v584_v35 = vrot.slane %v583_v34, 4 }
  0xc4   : > { %v585_v36 = vadd.f32 %v584_v35, %v583_v34 }
  0xc6   : > { %v586_v37 = vrot.slane %v585_v36, 2 }
  0xc8   : > { %v587_v38 = vadd.f32 %v586_v37, %v585_v36 }
  0xca   : > { %v588_v39 = vrot.slane %v587_v38, 1 }
  0xcc   : > { %v589_v40 = vadd.f32 %v588_v39, %v587_v38 }
  0xce   : > { %861 = vpush %v589_v40 }
  0xd0   : > { %v513_v41 = vpop.f32.mrf.mxu0 }
  0xd1   : > { %v526_v43 = vpop.f32.mrf.mxu1 }
  0xd2   : > { %v527_v44 = vadd.f32 %v526_v43, %v513_v41 }
  0xd4   : > { %v530_v45 = vadd.f32 %v527_v44, %v399_v42 }
  0xd6   : > { %531 = vst [vmem:[%s1164_s10] sm:$0x3] %v530_v45  ;;  %v550_v46 = vpop.f32.mrf.mxu2 }
  0xd7   : > { %v563_v48 = vpop.f32.mrf.mxu3 }
  0xd8   : > { %v564_v49 = vadd.f32 %v563_v48, %v550_v46  ;;  %v515_v50 = vpop.f32.mrf.mxu0 }
  0xd9   : > { %v528_v51 = vpop.f32.mrf.mxu1 }
  0xda   : > { %v567_v52 = vadd.f32 %v564_v49, %v532_v47 }
  0xdc   : > { %568 = vst [vmem:[%s1175_s17] sm:$0x3] %v567_v52 }
  0xde   : > { %v552_v53 = vpop.f32.mrf.mxu2 }
  0xdf   : > { %v565_v54 = vpop.f32.mrf.mxu3 }
  0xff   : > { %s862_s2 = spop %861 }
 0x100   : > { %v591_v56 = vstv %s862_s2 }
 0x101   : > { %v592_v57 = vadd.f32 %v591_v56, %v569_v55 }
 0x103   : > { %594 = vst.msk [vmem:[%s1159_s26] sm:$0x1] %vm593_vm2, %v592_v57 }
 0x104 PF: > { %s19_s25 = sadd.s32 1, %s1033_s25   ;;  %s1241_s22 = sld [smem:[#allocation5_spill]] }
 0x105   : > { %p16_p3 = scmp.ge.s32.totalorder %s19_s25, 6   ;;  %s1242_s24 = sld [smem:[#allocation6_spill]] }
 0x106   : > { %s1243_s18 = smov %s1009_s19  ;;  %s1244_s19 = smov %s1013_s20 }
 0x107   : > { %s1245_s20 = smov %s1134_s15  ;;  %s1246_s21 = smov %s1025_s23 }
 0x108   : > { %s1247_s23 = smov %s1249_s27  ;;  %18 = sbr.rel (!%p16_p3) target bundleno = 7 (0x7), region = 106 }
 0x10d   :  { %640 = vsyncpa [#allocation3], 1 }
 0x10e   :  { %642 = vsyncpa [#allocation3 + $0x1], 1 }

</bundles_post_ra>
